<compile_context>
chip_gen: v7x
topology: tpu7x:2x2x1
jax: 0.10.0
libtpu: 0.0.40
codegen_flags: <defaults>
</compile_context>

<pallas_src>
import math

import jax
import jax.numpy as jnp
from jax.experimental import pallas as pl
from jax.experimental.pallas import tpu as pltpu


def _vmem_limit_bytes():
    """Generation-aware VMEM budget: 75% of physical per-core VMEM, capped at 96 MiB.

    v5e/v6e have 128 MiB/TC -> 96 MiB; v7x has 64 MiB/TC -> 48 MiB (headroom for
    double-buffering + compiler internal scratch)."""
    try:
        cap = pltpu.get_tpu_info().vmem_capacity_bytes
    except Exception:
        cap = 64 * 1024 * 1024
    return int(min(cap - cap // 4, 96 * 1024 * 1024))


_VMEM_LIMIT = _vmem_limit_bytes()


def _pick_tile(extent, pref):
    """Return (tile, padded_extent).  Small extents use one full-extent tile; large
    extents use the preferred tile with the extent padded up to a multiple of it
    (never the silent full-extent fallback that blows up VMEM)."""
    if extent <= pref:
        return extent, extent
    if extent % pref == 0:
        return pref, extent
    return pref, pl.cdiv(extent, pref) * pref


# ----------------------------------------------------------------------------
# Generic streamed-K tiled matmul: bf16 operands, f32 accumulation.
# ----------------------------------------------------------------------------
def _matmul_kernel(a_ref, b_ref, o_ref, acc_ref):
    @pl.when(pl.program_id(2) == 0)
    def _():
        acc_ref[...] = jnp.zeros_like(acc_ref)

    acc_ref[...] += jnp.dot(a_ref[...], b_ref[...],
                            preferred_element_type=jnp.float32)

    @pl.when(pl.program_id(2) == pl.num_programs(2) - 1)
    def _():
        o_ref[...] = acc_ref[...].astype(o_ref.dtype)


def _matmul(a, b, *, out_dtype, tm=512, tn=512, tk=1024):
    M, K = a.shape
    _, N = b.shape
    tm, Mp = _pick_tile(M, tm)
    tn, Np = _pick_tile(N, tn)
    tk, Kp = _pick_tile(K, tk)

    a = a.astype(jnp.bfloat16)
    b = b.astype(jnp.bfloat16)
    if (Mp, Kp) != (M, K):
        a = jnp.pad(a, ((0, Mp - M), (0, Kp - K)))
    if (Kp, Np) != (K, N):
        b = jnp.pad(b, ((0, Kp - K), (0, Np - N)))

    out = pl.pallas_call(
        _matmul_kernel,
        out_shape=jax.ShapeDtypeStruct((Mp, Np), out_dtype),
        grid_spec=pltpu.PrefetchScalarGridSpec(
            num_scalar_prefetch=0,
            grid=(Mp // tm, Np // tn, Kp // tk),
            in_specs=[pl.BlockSpec((tm, tk), lambda i, j, k: (i, k)),
                      pl.BlockSpec((tk, tn), lambda i, j, k: (k, j))],
            out_specs=pl.BlockSpec((tm, tn), lambda i, j, k: (i, j)),
            scratch_shapes=[pltpu.VMEM((tm, tn), jnp.float32)]),
        compiler_params=pltpu.CompilerParams(
            dimension_semantics=("parallel", "parallel", "arbitrary"),
            vmem_limit_bytes=_VMEM_LIMIT),
    )(a, b)
    if (Mp, Np) != (M, N):
        out = out[:M, :N]
    return out


# ----------------------------------------------------------------------------
# Flash attention kernel with fused RoPE, GQA-group K/V sharing, online softmax,
# in-kernel causal mask.  Grid: (B, n_kv_heads, q_tiles, kv_tiles).
# ----------------------------------------------------------------------------
def _flash_kernel(q_ref, k_ref, v_ref, cq_ref, sq_ref, ck_ref, sk_ref, o_ref,
                  qrot_sc, m_sc, l_sc, acc_sc):
    qi = pl.program_id(2)
    ki = pl.program_id(3)
    n_rep, tq, hd = q_ref.shape[2], q_ref.shape[3], q_ref.shape[4]
    tkv = k_ref.shape[2]
    half = hd // 2

    @pl.when(ki == 0)
    def _():
        # RoPE Q once per (b, kv_head, q_tile) into a bf16 scratch; the 1/sqrt(hd)
        # scale is folded into Wq offline.  Layout per head is [real half | imag half],
        # so rotate-half + sign-folded sin implements the complex rotation.
        q = q_ref[0, 0].astype(jnp.float32)                       # (n_rep, tq, hd)
        q_rot = jnp.concatenate([q[..., half:], q[..., :half]], axis=-1)
        roped = q * cq_ref[...] + q_rot * sq_ref[...]             # (tq,hd) broadcasts
        qrot_sc[...] = roped.astype(qrot_sc.dtype)
        m_sc[...] = jnp.full_like(m_sc, -1e30)
        l_sc[...] = jnp.zeros_like(l_sc)
        acc_sc[...] = jnp.zeros_like(acc_sc)

    # Skip KV tiles that lie entirely in the causal future of this Q tile
    # (the clamped index_map already skipped their DMA).
    @pl.when(ki * tkv <= qi * tq + (tq - 1))
    def _():
        # RoPE the resident K tile (shared across the n_rep heads of the group).
        k = k_ref[0, 0].astype(jnp.float32)                       # (tkv, hd)
        k_rot = jnp.concatenate([k[:, half:], k[:, :half]], axis=-1)
        k_bf = (k * ck_ref[...] + k_rot * sk_ref[...]).astype(jnp.bfloat16)
        v_tile = v_ref[0, 0]                                      # (tkv, hd) bf16

        # Causal mask computed in-kernel (no (S,S) HBM mask); shared by all heads.
        qpos = qi * tq + jax.lax.broadcasted_iota(jnp.int32, (tq, tkv), 0)
        kpos = ki * tkv + jax.lax.broadcasted_iota(jnp.int32, (tq, tkv), 1)
        visible = kpos <= qpos

        # Back-to-back matmuls for the n_rep query heads of this GQA group keep the
        # MXU fed while the K/V tile is fetched only once per group.
        for r in range(n_rep):
            q_r = qrot_sc[r]                                      # (tq, hd) bf16
            s = jax.lax.dot_general(q_r, k_bf, (((1,), (1,)), ((), ())),
                                    preferred_element_type=jnp.float32)  # (tq, tkv)
            s = jnp.where(visible, s, -1e30)

            m_prev = m_sc[r]
            m_new = jnp.maximum(m_prev, jnp.max(s, axis=-1, keepdims=True))
            alpha = jnp.exp(m_prev - m_new)
            p = jnp.exp(s - m_new)                                # f32
            l_sc[r] = alpha * l_sc[r] + jnp.sum(p, axis=-1, keepdims=True)
            acc_sc[r] = alpha * acc_sc[r] + jnp.dot(
                p.astype(jnp.bfloat16), v_tile,
                preferred_element_type=jnp.float32)
            m_sc[r] = m_new

    @pl.when(ki == pl.num_programs(3) - 1)
    def _():
        inv_l = pl.reciprocal(l_sc[...], approx=False)            # exact; once per tile
        o_ref[0, 0] = (acc_sc[...] * inv_l).astype(o_ref.dtype)


def _flash_attention(q, k, v, cos_t, sin_t, *, t_pref=512):
    """q: (B, Hk, n_rep, S, hd) bf16, k/v: (B, Hk, S, hd) bf16, cos/sin: (S, hd) f32."""
    B, Hk, n_rep, S, hd = q.shape

    if S <= t_pref:
        tq = tkv = Sp = S
    else:
        tq = tkv = t_pref
        Sp = pl.cdiv(S, t_pref) * t_pref
    if Sp != S:
        pad = Sp - S
        # Padded KV positions are causally masked for all real queries; padded query
        # rows produce finite garbage that is sliced off below.
        q = jnp.pad(q, ((0, 0), (0, 0), (0, 0), (0, pad), (0, 0)))
        k = jnp.pad(k, ((0, 0), (0, 0), (0, pad), (0, 0)))
        v = jnp.pad(v, ((0, 0), (0, 0), (0, pad), (0, 0)))
        cos_t = jnp.pad(cos_t, ((0, pad), (0, 0)))
        sin_t = jnp.pad(sin_t, ((0, pad), (0, 0)))

    grid = (B, Hk, Sp // tq, Sp // tkv)

    def q_map(b, kh, qi, ki):
        return (b, kh, 0, qi, 0)

    def kv_map(b, kh, qi, ki):
        # Clamp to the last causally-needed tile: repeated block indices make the
        # pipeline skip the DMA of pure-future KV tiles.
        last = (qi * tq + (tq - 1)) // tkv
        return (b, kh, jnp.minimum(ki, last), 0)

    def cq_map(b, kh, qi, ki):
        return (qi, 0)

    def ck_map(b, kh, qi, ki):
        last = (qi * tq + (tq - 1)) // tkv
        return (jnp.minimum(ki, last), 0)

    out = pl.pallas_call(
        _flash_kernel,
        out_shape=jax.ShapeDtypeStruct((B, Hk, n_rep, Sp, hd), jnp.bfloat16),
        grid_spec=pltpu.PrefetchScalarGridSpec(
            num_scalar_prefetch=0,
            grid=grid,
            in_specs=[pl.BlockSpec((1, 1, n_rep, tq, hd), q_map),
                      pl.BlockSpec((1, 1, tkv, hd), kv_map),
                      pl.BlockSpec((1, 1, tkv, hd), kv_map),
                      pl.BlockSpec((tq, hd), cq_map),
                      pl.BlockSpec((tq, hd), cq_map),
                      pl.BlockSpec((tkv, hd), ck_map),
                      pl.BlockSpec((tkv, hd), ck_map)],
            out_specs=pl.BlockSpec((1, 1, n_rep, tq, hd), q_map),
            scratch_shapes=[pltpu.VMEM((n_rep, tq, hd), jnp.bfloat16),   # roped Q
                            pltpu.VMEM((n_rep, tq, 1), jnp.float32),     # running max
                            pltpu.VMEM((n_rep, tq, 1), jnp.float32),     # running sum
                            pltpu.VMEM((n_rep, tq, hd), jnp.float32)]),  # accumulator
        compiler_params=pltpu.CompilerParams(
            dimension_semantics=("parallel", "parallel", "parallel", "arbitrary"),
            vmem_limit_bytes=_VMEM_LIMIT),
    )(q, k, v, cos_t, sin_t, cos_t, sin_t)

    if Sp != S:
        out = out[:, :, :, :S, :]
    return out


# ----------------------------------------------------------------------------
# Full Attention.forward (prefill, start_pos=0).
# ----------------------------------------------------------------------------
def attention_pallas(x, wq, wk, wv, wo, cos, sin, *, n_heads, n_kv_heads, head_dim):
    """x: (B, S, D) f32.  wq: (D, Hq*hd), wk/wv: (D, Hk*hd), wo: (Hq*hd, D).
    cos/sin: (S, hd//2) rotary tables for positions 0..S-1."""
    B, S, D = x.shape
    Hq, Hk, hd = n_heads, n_kv_heads, head_dim
    qdim, kdim = Hq * hd, Hk * hd
    n_rep = Hq // Hk
    scale = 1.0 / math.sqrt(hd)

    # ---- one-time weight prep (would be folded into checkpoint loading) ----
    # Per-head de-interleave of the RoPE pairs: [r0,i0,r1,i1,...] -> [r...,i...].
    # Q.K^T is invariant to applying the same permutation to both Q and K.
    perm_head = jnp.concatenate([jnp.arange(0, hd, 2), jnp.arange(1, hd, 2)])
    perm_q = (jnp.arange(Hq)[:, None] * hd + perm_head[None, :]).reshape(-1)
    perm_k = (jnp.arange(Hk)[:, None] * hd + perm_head[None, :]).reshape(-1)
    wq_p = (wq[:, perm_q] * scale).astype(jnp.bfloat16)   # fold 1/sqrt(hd) into Wq
    wk_p = wk[:, perm_k].astype(jnp.bfloat16)
    wv_b = wv.astype(jnp.bfloat16)
    wo_b = wo.astype(jnp.bfloat16)
    w_qkv = jnp.concatenate([wq_p, wk_p, wv_b], axis=1)   # (D, qdim + 2*kdim)

    # Single (S, hd) rope tables (sign folded into sin for the rotate-half form).
    cos_t = jnp.concatenate([cos, cos], axis=-1).astype(jnp.float32)
    sin_t = jnp.concatenate([-sin, sin], axis=-1).astype(jnp.float32)

    # ---- fused QKV projection (bf16 MXU, streamed-K) ----
    qkv = _matmul(x.reshape(B * S, D), w_qkv, out_dtype=jnp.bfloat16)
    xq = qkv[:, :qdim].reshape(B, S, Hq, hd).transpose(0, 2, 1, 3)          # (B,Hq,S,hd)
    xk = qkv[:, qdim:qdim + kdim].reshape(B, S, Hk, hd).transpose(0, 2, 1, 3)
    xv = qkv[:, qdim + kdim:].reshape(B, S, Hk, hd).transpose(0, 2, 1, 3)

    # Free view: group the n_rep query heads that share a kv head (repeat_interleave
    # semantics: query head h uses kv head h // n_rep).
    xq = xq.reshape(B, Hk, n_rep, S, hd)

    # TODO(synk): start_pos > 0 decode path (KV-cache write + history read) not implemented.

    # ---- flash attention (causal, GQA, fused RoPE) ----
    attn = _flash_attention(xq, xk, xv, cos_t, sin_t)     # (B, Hk, n_rep, S, hd) bf16

    # ---- output projection ----
    out2d = attn.reshape(B, Hq, S, hd).transpose(0, 2, 1, 3).reshape(B * S, qdim)
    out = _matmul(out2d, wo_b, out_dtype=jnp.float32)     # (B*S, D) f32
    return out.reshape(B, S, D)


# ----------------------------------------------------------------------------
# Pure-JAX f32 reference (mirrors the PyTorch forward exactly, start_pos=0).
# ----------------------------------------------------------------------------
def attention_ref(x, wq, wk, wv, wo, cos, sin, mask, *, n_heads, n_kv_heads, head_dim):
    B, S, D = x.shape
    n_rep = n_heads // n_kv_heads
    xq = (x @ wq).reshape(B, S, n_heads, head_dim)
    xk = (x @ wk).reshape(B, S, n_kv_heads, head_dim)
    xv = (x @ wv).reshape(B, S, n_kv_heads, head_dim)

    def rope(t):
        H = t.shape[2]
        tr = t.reshape(B, S, H, head_dim // 2, 2)
        xr, xi = tr[..., 0], tr[..., 1]
        c = cos[None, :, None, :]
        s = sin[None, :, None, :]
        orr = xr * c - xi * s
        oii = xr * s + xi * c
        return jnp.stack([orr, oii], axis=-1).reshape(B, S, H, head_dim)

    xq = rope(xq)
    xk = rope(xk)

    keys = jnp.repeat(xk, n_rep, axis=2)
    values = jnp.repeat(xv, n_rep, axis=2)

    q = jnp.transpose(xq, (0, 2, 1, 3))
    k = jnp.transpose(keys, (0, 2, 1, 3))
    v = jnp.transpose(values, (0, 2, 1, 3))

    scores = jnp.einsum('bhqd,bhkd->bhqk', q, k) / math.sqrt(head_dim)
    scores = scores + mask[None, None, :, :]
    probs = jax.nn.softmax(scores.astype(jnp.float32), axis=-1)
    out = jnp.einsum('bhqk,bhkd->bhqd', probs, v)
    out = jnp.transpose(out, (0, 2, 1, 3)).reshape(B, S, n_heads * head_dim)
    return out @ wo


# ----------------------------------------------------------------------------
if __name__ == "__main__":
    bsz, seqlen = 2, 8
    dim, n_heads, n_kv_heads = 32, 4, 2
    head_dim = dim // n_heads                 # 8
    rope_theta = 500000.0
    start_pos = 0

    key = jax.random.PRNGKey(0)
    kx, kq, kk, kv, ko = jax.random.split(key, 5)
    w_scale = dim ** -0.5
    x = jax.random.normal(kx, (bsz, seqlen, dim), dtype=jnp.float32)
    wq = w_scale * jax.random.normal(kq, (dim, n_heads * head_dim), dtype=jnp.float32)
    wk = w_scale * jax.random.normal(kk, (dim, n_kv_heads * head_dim), dtype=jnp.float32)
    wv = w_scale * jax.random.normal(kv, (dim, n_kv_heads * head_dim), dtype=jnp.float32)
    wo = w_scale * jax.random.normal(ko, (n_heads * head_dim, dim), dtype=jnp.float32)

    # Rotary tables (same recipe as llama precompute_freqs_cis), sliced at start_pos.
    freqs = 1.0 / (rope_theta ** (jnp.arange(0, head_dim, 2, dtype=jnp.float32) / head_dim))
    t = jnp.arange(start_pos, start_pos + seqlen, dtype=jnp.float32)
    angles = jnp.outer(t, freqs)              # (S, hd//2)
    cos = jnp.cos(angles)
    sin = jnp.sin(angles)

    out = attention_pallas(x, wq, wk, wv, wo, cos, sin,
                           n_heads=n_heads, n_kv_heads=n_kv_heads, head_dim=head_dim)
    out = jax.block_until_ready(out)

    # f32 reference with an explicit causal mask (the kernel builds it in-kernel).
    i = jnp.arange(seqlen)[:, None]
    j = jnp.arange(seqlen)[None, :]
    mask = jnp.where(j <= i, 0.0, -1e30).astype(jnp.float32)
    ref = attention_ref(x, wq, wk, wv, wo, cos, sin, mask,
                        n_heads=n_heads, n_kv_heads=n_kv_heads, head_dim=head_dim)

    assert out.shape == (bsz, seqlen, dim)
    err = float(jnp.max(jnp.abs(out - ref)))
    ref_max = float(jnp.max(jnp.abs(ref)))
    # bf16 matmul operands => relaxed tolerance vs the f32 reference.
    assert err <= 5e-2 * max(ref_max, 1.0), f"max abs err {err} (ref max {ref_max})"

    print("KERNEL_OK")
</pallas_src>

<mosaic_0001>
module attributes {stable_mosaic.version = 11 : i64} {
  func.func @_matmul_kernel(%arg0: i32, %arg1: i32, %arg2: i32, %arg3: memref<16x32xbf16, #tpu.memory_space<vmem>>, %arg4: memref<32x64xbf16, #tpu.memory_space<vmem>>, %arg5: memref<16x64xbf16, #tpu.memory_space<vmem>>, %arg6: memref<16x64xf32, #tpu.memory_space<vmem>>) attributes {dimension_semantics = [#tpu.dimension_semantics<parallel>, #tpu.dimension_semantics<parallel>, #tpu.dimension_semantics<arbitrary>], iteration_bounds = array<i64: 1, 1, 1>, scalar_prefetch = 0 : i64, scratch_operands = 1 : i64, tpu.core_type = #tpu.core_type<tc>, window_params = [{transform_indices = @transform_0, window_bounds = array<i64: 16, 32>}, {transform_indices = @transform_1, window_bounds = array<i64: 32, 64>}, {transform_indices = @transform_2, window_bounds = array<i64: 16, 64>}]} {
    %c0_i32 = arith.constant 0 : i32
    %0 = arith.cmpi eq, %arg2, %c0_i32 : i32
    %1 = arith.extui %0 : i1 to i32
    %c0_i32_0 = arith.constant 0 : i32
    %2 = arith.cmpi ne, %1, %c0_i32_0 : i32
    scf.if %2 {
      %cst_10 = arith.constant 0.000000e+00 : f32
      %12 = vector.broadcast %cst_10 : f32 to vector<16x64xf32>
      %c0_11 = arith.constant 0 : index
      %c0_12 = arith.constant 0 : index
      %13 = vector.load %arg6[%c0_11, %c0_12] : memref<16x64xf32, #tpu.memory_space<vmem>>, vector<16x64xf32>
      tpu.vector_store %arg6[%c0_11, %c0_12], %12 {strides = array<i32>} : memref<16x64xf32, #tpu.memory_space<vmem>>, vector<16x64xf32>,
    } else {
    }
    %c0 = arith.constant 0 : index
    %c0_1 = arith.constant 0 : index
    %3 = vector.load %arg6[%c0, %c0_1] : memref<16x64xf32, #tpu.memory_space<vmem>>, vector<16x64xf32>
    %c0_2 = arith.constant 0 : index
    %c0_3 = arith.constant 0 : index
    %4 = vector.load %arg3[%c0_2, %c0_3] : memref<16x32xbf16, #tpu.memory_space<vmem>>, vector<16x32xbf16>
    %c0_4 = arith.constant 0 : index
    %c0_5 = arith.constant 0 : index
    %5 = vector.load %arg4[%c0_4, %c0_5] : memref<32x64xbf16, #tpu.memory_space<vmem>>, vector<32x64xbf16>
    %cst = arith.constant dense<0.000000e+00> : vector<16x64xf32>
    %6 = tpu.matmul %4, %5, %cst {dimension_numbers = #tpu.dot_dimension_numbers<[1], [0], [0], [1], [0, 0, 1, 1], [], []>} : vector<16x32xbf16>, vector<32x64xbf16>, vector<16x64xf32> -> vector<16x64xf32>
    %7 = arith.addf %3, %6 : vector<16x64xf32>
    %c0_6 = arith.constant 0 : index
    %c0_7 = arith.constant 0 : index
    %8 = vector.load %arg6[%c0_6, %c0_7] : memref<16x64xf32, #tpu.memory_space<vmem>>, vector<16x64xf32>
    tpu.vector_store %arg6[%c0_6, %c0_7], %7 {strides = array<i32>} : memref<16x64xf32, #tpu.memory_space<vmem>>, vector<16x64xf32>,
    %c0_i32_8 = arith.constant 0 : i32
    %9 = arith.cmpi eq, %arg2, %c0_i32_8 : i32
    %10 = arith.extui %9 : i1 to i32
    %c0_i32_9 = arith.constant 0 : i32
    %11 = arith.cmpi ne, %10, %c0_i32_9 : i32
    scf.if %11 {
      %c0_10 = arith.constant 0 : index
      %c0_11 = arith.constant 0 : index
      %12 = vector.load %arg6[%c0_10, %c0_11] : memref<16x64xf32, #tpu.memory_space<vmem>>, vector<16x64xf32>
      %13 = arith.truncf %12 : vector<16x64xf32> to vector<16x64xbf16>
      %c0_12 = arith.constant 0 : index
      %c0_13 = arith.constant 0 : index
      %14 = vector.load %arg5[%c0_12, %c0_13] : memref<16x64xbf16, #tpu.memory_space<vmem>>, vector<16x64xbf16>
      tpu.vector_store %arg5[%c0_12, %c0_13], %13 {strides = array<i32>} : memref<16x64xbf16, #tpu.memory_space<vmem>>, vector<16x64xbf16>,
    } else {
    }
    return
  }
  func.func @transform_0(%arg0: i32, %arg1: i32, %arg2: i32) -> (i32, i32) {
    %c0_i32 = arith.constant 0 : i32
    return %arg0, %arg2 : i32, i32
  }
  func.func @transform_1(%arg0: i32, %arg1: i32, %arg2: i32) -> (i32, i32) {
    %c0_i32 = arith.constant 0 : i32
    return %arg2, %arg1 : i32, i32
  }
  func.func @transform_2(%arg0: i32, %arg1: i32, %arg2: i32) -> (i32, i32) {
    %c0_i32 = arith.constant 0 : i32
    return %arg0, %arg1 : i32, i32
  }
}

</mosaic_0001>

<bundles_post_ra>
// kernel: tpu_custom_call.1
= control target key start
LH: loop header
LB: loop body
LE: loop exit
PB: predicated region body
PF: predicated region fallthrough
CT: control target
= control target key end

     0   :  { %7 = vsyncpa [#allocation4], 0  ;;  %s329_s0 = inlined_call_operand.hbm [shape: bf16[16,32], index: 0, kind: input, shape index: {}]   ;;  %s330_s1 = inlined_call_operand.hbm [shape: bf16[32,64], index: 1, kind: input, shape index: {}]   ;;  %s331_s2 = inlined_call_operand.hbm [shape: bf16[16,64], index: 2, kind: output, shape index: {}]  }
   0x1   :  { %8 = vsyncpa [#allocation7], 0 }
   0x2   :  { %9 = vsyncpa [#allocation5], 0  ;;  %s258_s9 = smov [#allocation3]   ;;  %s186_s13 = scalar_lea.hbm %s329_s0, 128 }
   0x3   :  { %s15_s10 = sshll.u32 %s258_s9, 4  ;;  %p187_p0 = scmp.ne.s32.totalorder %s329_s0, %s186_s13  ;;  %s16_s10 = int_to_ptr.vmem [resolvable:$true] %s15_s10 }
   0x4   :  { %p190_p1 = scmp.lt.u32.totalorder %s186_s13, %s329_s0 }
   0x6   :  { %p192_p2 = pnand %p190_p1, %p187_p0 }
   0x8   :  { %195 = shalt.err (!%p192_p2)
}
   0x9   :  { %s196_s18 = scalar_lea.vmem %s16_s10, 128  ;;  %p201_p4 = scmp.lt.s32.totalorder %s16_s10, %s16_s10 }
   0xa   :  { %p197_p3 = scmp.ne.s32.totalorder %s16_s10, %s196_s18  ;;  %p202_p5 = scmp.lt.s32.totalorder %s196_s18, %s196_s18 }
   0xc   :  { %p203_p6 = por %p202_p5, %p201_p4 }
   0xe   :  { %p204_p7 = pnand %p203_p6, %p197_p3 }
  0x10   :  { %207 = shalt.err (!%p204_p7)
}
  0x11   :  { %s259_s19 = smov 64   ;;  %s260_s20 = smov 4  }
  0x12   :  { %21 = dma.hbm_to_vmem [thread:$0]  %s329_s0, 128, %s16_s10, [#allocation4], %s259_s19, %s259_s19, %s260_s20  }
  0x13   :  { %s261_s23 = smov [#allocation6]   ;;  %s208_s27 = scalar_lea.hbm %s330_s1, 256 }
  0x14   :  { %s27_s24 = sshll.u32 %s261_s23, 4  ;;  %p209_p8 = scmp.ne.s32.totalorder %s330_s1, %s208_s27  ;;  %s28_s24 = int_to_ptr.vmem [resolvable:$true] %s27_s24 }
  0x15   :  { %p212_p9 = scmp.lt.u32.totalorder %s208_s27, %s330_s1 }
  0x17   :  { %p214_p10 = pnand %p212_p9, %p209_p8 }
  0x19   :  { %217 = shalt.err (!%p214_p10)
}
  0x1a   :  { %s218_s4 = scalar_lea.vmem %s28_s24, 256  ;;  %p223_p12 = scmp.lt.s32.totalorder %s28_s24, %s28_s24 }
  0x1b   :  { %p219_p11 = scmp.ne.s32.totalorder %s28_s24, %s218_s4  ;;  %p224_p13 = scmp.lt.s32.totalorder %s218_s4, %s218_s4 }
  0x1d   :  { %p225_p0 = por %p224_p13, %p223_p12 }
  0x1f   :  { %p226_p1 = pnand %p225_p0, %p219_p11 }
  0x21   :  { %229 = shalt.err (!%p226_p1)
}
  0x22   :  { %33 = dma.hbm_to_vmem [thread:$0]  %s330_s1, 256, %s28_s24, [#allocation7], %s259_s19, %s259_s19, %s260_s20  }
  0x23   :  { %252 = dma.done.wait [#allocation4], 128  }
  0x24   :  { %253 = vsyncadd [#allocation4], 4294967168 }
  0x25   :  { %254 = dma.done.wait [#allocation7], 256  }
  0x26   :  { %255 = vsyncadd [#allocation7], 4294967040  ;;  %vm45_vm0 = vcmask 523264   ;;  %v262_v0 = vmov 0.0   ;;  %vm263_vm1 = vmmov 0   ;;  %v183_v1 = vld [vmem:[#allocation6] sm:$0xff]  }
  0x27   :  { %46 = vst.msk [vmem:[#allocation2] sm:$0xff] %vm45_vm0, %v262_v0  ;;  %47 = vst.msk [vmem:[#allocation2 + $0x8] sm:$0xff] %vm45_vm0, %v262_v0  ;;  %168 = vmatprep.subr.bf16.mxu0 %v262_v0  ;;  %172 = vmatprep.mubr.msk.bf16.mxu0 %vm263_vm1, %v262_v0  ;;  %v184_v2 = vld [vmem:[#allocation6 + $0x8] sm:$0xff]   ;;  %v185_v3 = vld [vmem:[#allocation3] sm:$0xff]   ;;  %vm73_vm2 = vcmask 261120   ;;  %vm136_vm3 = vcmask 519168  }
  0x28   :  { %169 = vmatpush3.bf16.msra.mxu0 %v183_v1  ;;  %s264_s1 = smov [#allocation8]  }
  0x29   :  { %170 = vmatprep.subr.bf16.mxu0 %v262_v0  ;;  %s144_s6 = sshll.u32 %s264_s1, 4  ;;  %s145_s6 = int_to_ptr.vmem [resolvable:$true] %s144_s6 }
  0x2a   :  { %s230_s7 = scalar_lea.vmem %s145_s6, 128  ;;  %p235_p3 = scmp.lt.s32.totalorder %s145_s6, %s145_s6 }
  0x2b   :  { %p231_p2 = scmp.ne.s32.totalorder %s145_s6, %s230_s7  ;;  %p236_p4 = scmp.lt.s32.totalorder %s230_s7, %s230_s7 }
  0x2c   :  { %171 = vmatpush3.bf16.msra.mxu0 %v184_v2 }
  0x2d   :  { %p237_p5 = por %p236_p4, %p235_p3 }
  0x2e   :  { %v48_v4 = vld [vmem:[#allocation2] sm:$0xff]  ;;  %v49_v6 = vld [vmem:[#allocation2 + $0x8] sm:$0xff] }
  0x2f   :  { %173 = vmatmul.mubr.msk.bf16.vlgmr.msra.gmra.mrb[0].mxu0 %vm73_vm2, %v185_v3  ;;  %p238_p6 = pnand %p237_p5, %p231_p2 }
 0x102   :  { %v111_v5 = vpop.f32.mrb[0].mxu0 }
 0x103   :  { %v118_v7 = vadd.f32 %v111_v5, %v48_v4  ;;  %v174_v8 = vpop.f32.mrb[1].mxu0 }
 0x104   :  { %v114_v9 = vpop.f32.mrb[2].mxu0 }
 0x105   :  { %121 = vst.msk [vmem:[#allocation2] sm:$0xff] %vm45_vm0, %v118_v7  ;;  %v119_v10 = vadd.f32 %v114_v9, %v49_v6  ;;  %v175_v11 = vpop.f32.mrb[3].mxu0 }
 0x107   :  { %122 = vst.msk [vmem:[#allocation2 + $0x8] sm:$0xff] %vm45_vm0, %v119_v10 }
 0x10c   :  { %v126_v12 = vld [vmem:[#allocation2] sm:$0xff] }
 0x10d   :  { %v163_v13 = vpack.c.bf16 %v126_v12, %v126_v12 }
 0x10e   :  { %v127_v14 = vld [vmem:[#allocation2 + $0x8] sm:$0xff] }
 0x10f   :  { %v164_v15 = vpack.c.bf16 %v127_v14, %v127_v14  ;;  %137 = vst.msk [vmem:[#allocation8] sm:$0xf] %vm136_vm3, %v163_v13 }
 0x111   :  { %138 = vst.msk [vmem:[#allocation8 + $0x4] sm:$0xf] %vm136_vm3, %v164_v15 }
 0x112   :  { %241 = shalt.err (!%p238_p6)
}
 0x113   :  { %s242_s10 = scalar_lea.hbm %s331_s2, 128 }
 0x114   :  { %p243_p7 = scmp.ne.s32.totalorder %s331_s2, %s242_s10  ;;  %p246_p8 = scmp.lt.u32.totalorder %s242_s10, %s331_s2 }
 0x116   :  { %p248_p9 = pnand %p246_p8, %p243_p7 }
 0x118   :  { %251 = shalt.err (!%p248_p9)
}
 0x119   :  { %150 = dma.vmem_to_hbm [thread:$0]  %s145_s6, 128, %s331_s2, [#allocation5], %s259_s19, %s259_s19, %s260_s20  }
 0x11a   :  { %256 = dma.done.wait [#allocation5], 128  }
 0x11b   :  { %257 = vsyncadd [#allocation5], 4294967168 }
 0x11c   :  { %154 = vsyncpa [#allocation4], 1 }
 0x11d   :  { %155 = vsyncpa [#allocation7], 1 }
 0x11e   :  { %156 = vsyncpa [#allocation5], 1 }

</bundles_post_ra>
